<compile_context>
chip_gen: v7x
topology: tpu7x:2x2x1
jax: 0.10.0
libtpu: 0.0.40
codegen_flags: <defaults>
</compile_context>

<pallas_src>
import functools

import jax
import jax.numpy as jnp
from jax import lax
from jax.experimental import pallas as pl
from jax.experimental.pallas import tpu as pltpu

EPS = 1e-5  # nn.InstanceNorm2d default eps


def _adain_rows_kernel(x_ref, g_ref, b_ref, o_ref, *, hw_true, hw_pad):
    # x_ref : (TR, HWp)  row-group of flattened (instance, channel) rows
    # g_ref : (TR, 1)    gamma per row (from the hoisted fc)
    # b_ref : (TR, 1)    beta per row
    # o_ref : (TR, HWp)
    x = x_ref[...].astype(jnp.float32)
    gamma = g_ref[...].astype(jnp.float32)
    beta = b_ref[...].astype(jnp.float32)

    if hw_pad != hw_true:
        # Padded lanes must not contribute to the stats.
        lane = lax.broadcasted_iota(jnp.int32, x.shape, dimension=1)
        mask = (lane < hw_true).astype(jnp.float32)
        inv_n = 1.0 / float(hw_true)
        mean = jnp.sum(x * mask, axis=-1, keepdims=True) * inv_n
        xc = (x - mean) * mask
        var = jnp.sum(xc * xc, axis=-1, keepdims=True) * inv_n
    else:
        mean = jnp.mean(x, axis=-1, keepdims=True)         # (TR, 1)
        xc = x - mean
        var = jnp.mean(xc * xc, axis=-1, keepdims=True)    # biased, (TR, 1)

    inv = lax.rsqrt(var + EPS)                              # (TR, 1)
    a = inv * (1.0 + gamma)                                 # (TR, 1)
    c = beta - mean * a                                     # (TR, 1)
    o_ref[...] = (x * a + c).astype(o_ref.dtype)            # single FMA pass


def adain(x, s, w_t, b, *, target_block_bytes=2 * 1024 * 1024):
    """AdaIN forward. x: (N, C, H, W), s: (N, D), w_t: (D, 2C), b: (2C,)."""
    N, C, H, W = x.shape
    HW = H * W
    R = N * C

    # --- fc(s) hoisted out of the kernel: one (N,D)@(D,2C) matmul ---
    h = s.astype(jnp.float32) @ w_t.astype(jnp.float32) + b.astype(jnp.float32)
    gamma = h[:, :C].reshape(R, 1)
    beta = h[:, C:].reshape(R, 1)

    # --- row layout, lane-dense spatial axis ---
    hw_pad = ((HW + 127) // 128) * 128
    x2 = x.reshape(R, HW)
    if hw_pad != HW:
        x2 = jnp.pad(x2, ((0, 0), (0, hw_pad - HW)))

    itemsize = jnp.dtype(x.dtype).itemsize
    # Row tile: multiple of 8, sized so one block is ~target_block_bytes.
    tr = max(8, (target_block_bytes // (hw_pad * itemsize)) // 8 * 8)
    tr = min(tr, ((R + 7) // 8) * 8)
    # TODO(synk): if 8*hw_pad*itemsize already exceeds the VMEM budget (huge
    # H*W), an extra "arbitrary" HW reduction axis with sum/sumsq scratch
    # would be needed; not required for typical AdaIN spatial sizes.
    r_pad = ((R + tr - 1) // tr) * tr
    if r_pad != R:
        x2 = jnp.pad(x2, ((0, r_pad - R), (0, 0)))
        gamma = jnp.pad(gamma, ((0, r_pad - R), (0, 0)))
        beta = jnp.pad(beta, ((0, r_pad - R), (0, 0)))

    kernel = functools.partial(_adain_rows_kernel, hw_true=HW, hw_pad=hw_pad)

    out = pl.pallas_call(
        kernel,
        out_shape=jax.ShapeDtypeStruct((r_pad, hw_pad), x.dtype),
        grid=(r_pad // tr,),
        in_specs=[
            pl.BlockSpec((tr, hw_pad), lambda r: (r, 0)),   # x rows
            pl.BlockSpec((tr, 1), lambda r: (r, 0)),        # gamma per row
            pl.BlockSpec((tr, 1), lambda r: (r, 0)),        # beta per row
        ],
        out_specs=pl.BlockSpec((tr, hw_pad), lambda r: (r, 0)),
        compiler_params=pltpu.CompilerParams(
            dimension_semantics=("parallel",)),
        cost_estimate=pl.CostEstimate(
            flops=7 * R * HW,
            transcendentals=R,
            bytes_accessed=2 * R * HW * itemsize),
    )(x2, gamma, beta)

    return out[:R, :HW].reshape(N, C, H, W)


def adain_reference(x, s, w_t, b):
    """Pure-JAX reference matching the PyTorch forward."""
    N, C, H, W = x.shape
    h = s @ w_t + b                                       # (N, 2C)
    gamma = h[:, :C].reshape(N, C, 1, 1)
    beta = h[:, C:].reshape(N, C, 1, 1)
    mean = jnp.mean(x, axis=(2, 3), keepdims=True)
    var = jnp.mean((x - mean) ** 2, axis=(2, 3), keepdims=True)
    norm = (x - mean) / jnp.sqrt(var + EPS)
    return (1 + gamma) * norm + beta


if __name__ == "__main__":
    # Small shapes consistent with the module's forward.
    N, C, H, W = 2, 4, 16, 16
    style_dim = 8

    key = jax.random.PRNGKey(0)
    kx, ks, kw, kb = jax.random.split(key, 4)

    x = jax.random.normal(kx, (N, C, H, W), dtype=jnp.float32)
    s = jax.random.normal(ks, (N, style_dim), dtype=jnp.float32)

    # nn.Linear(style_dim, 2*C): PyTorch weight is (2C, style_dim); keep the
    # transposed (style_dim, 2C) layout for the input-major matmul.
    bound = 1.0 / (style_dim ** 0.5)
    w_t = jax.random.uniform(kw, (style_dim, 2 * C), jnp.float32, -bound, bound)
    b = jax.random.uniform(kb, (2 * C,), jnp.float32, -bound, bound)

    out = adain(x, s, w_t, b)
    out = jax.block_until_ready(out)

    ref = adain_reference(x, s, w_t, b)
    assert out.shape == (N, C, H, W)
    assert jnp.allclose(out, ref, atol=1e-4, rtol=1e-4), \
        f"max abs err {jnp.max(jnp.abs(out - ref))}"

    print("KERNEL_OK")
</pallas_src>

<mosaic_0001>
module attributes {stable_mosaic.version = 11 : i64} {
  func.func @_adain_rows_kernel(%arg0: i32, %arg1: memref<8x256xf32, #tpu.memory_space<vmem>>, %arg2: memref<8x1xf32, #tpu.memory_space<vmem>>, %arg3: memref<8x1xf32, #tpu.memory_space<vmem>>, %arg4: memref<8x256xf32, #tpu.memory_space<vmem>>) attributes {dimension_semantics = [#tpu.dimension_semantics<parallel>], iteration_bounds = array<i64: 1>, scalar_prefetch = 0 : i64, scratch_operands = 0 : i64, tpu.core_type = #tpu.core_type<tc>, window_params = [{transform_indices = @transform_0, window_bounds = array<i64: 8, 256>}, {transform_indices = @transform_1, window_bounds = array<i64: 8, 1>}, {transform_indices = @transform_2, window_bounds = array<i64: 8, 1>}, {transform_indices = @transform_3, window_bounds = array<i64: 8, 256>}]} {
    %c0 = arith.constant 0 : index
    %c0_0 = arith.constant 0 : index
    %0 = vector.load %arg1[%c0, %c0_0] : memref<8x256xf32, #tpu.memory_space<vmem>>, vector<8x256xf32>
    %c0_1 = arith.constant 0 : index
    %c0_2 = arith.constant 0 : index
    %1 = vector.load %arg2[%c0_1, %c0_2] : memref<8x1xf32, #tpu.memory_space<vmem>>, vector<8x1xf32>
    %c0_3 = arith.constant 0 : index
    %c0_4 = arith.constant 0 : index
    %2 = vector.load %arg3[%c0_3, %c0_4] : memref<8x1xf32, #tpu.memory_space<vmem>>, vector<8x1xf32>
    %cst = arith.constant dense<0.000000e+00> : vector<8xf32>
    %3 = vector.multi_reduction <add>, %0, %cst [1] : vector<8x256xf32> to vector<8xf32>
    %4 = vector.shape_cast %3 : vector<8xf32> to vector<8x1xf32>
    %cst_5 = arith.constant 2.560000e+02 : f32
    %5 = vector.broadcast %cst_5 : f32 to vector<8x1xf32>
    %6 = arith.divf %4, %5 : vector<8x1xf32>
    %7 = vector.broadcast %6 : vector<8x1xf32> to vector<8x256xf32>
    %8 = arith.subf %0, %7 : vector<8x256xf32>
    %9 = arith.mulf %8, %8 : vector<8x256xf32>
    %cst_6 = arith.constant dense<0.000000e+00> : vector<8xf32>
    %10 = vector.multi_reduction <add>, %9, %cst_6 [1] : vector<8x256xf32> to vector<8xf32>
    %11 = vector.shape_cast %10 : vector<8xf32> to vector<8x1xf32>
    %cst_7 = arith.constant 2.560000e+02 : f32
    %12 = vector.broadcast %cst_7 : f32 to vector<8x1xf32>
    %13 = arith.divf %11, %12 : vector<8x1xf32>
    %cst_8 = arith.constant 9.99999974E-6 : f32
    %14 = vector.broadcast %cst_8 : f32 to vector<8x1xf32>
    %15 = arith.addf %13, %14 : vector<8x1xf32>
    %16 = math.rsqrt %15 : vector<8x1xf32>
    %cst_9 = arith.constant 1.000000e+00 : f32
    %17 = vector.broadcast %cst_9 : f32 to vector<8x1xf32>
    %18 = arith.addf %17, %1 : vector<8x1xf32>
    %19 = arith.mulf %16, %18 : vector<8x1xf32>
    %20 = arith.mulf %6, %19 : vector<8x1xf32>
    %21 = arith.subf %2, %20 : vector<8x1xf32>
    %22 = vector.broadcast %19 : vector<8x1xf32> to vector<8x256xf32>
    %23 = arith.mulf %0, %22 : vector<8x256xf32>
    %24 = vector.broadcast %21 : vector<8x1xf32> to vector<8x256xf32>
    %25 = arith.addf %23, %24 : vector<8x256xf32>
    %c0_10 = arith.constant 0 : index
    %c0_11 = arith.constant 0 : index
    %26 = vector.load %arg4[%c0_10, %c0_11] : memref<8x256xf32, #tpu.memory_space<vmem>>, vector<8x256xf32>
    tpu.vector_store %arg4[%c0_10, %c0_11], %25 {strides = array<i32>} : memref<8x256xf32, #tpu.memory_space<vmem>>, vector<8x256xf32>,
    return
  }
  func.func @transform_0(%arg0: i32) -> (i32, i32) {
    %c0_i32 = arith.constant 0 : i32
    %c0_i32_0 = arith.constant 0 : i32
    return %arg0, %c0_i32 : i32, i32
  }
  func.func @transform_1(%arg0: i32) -> (i32, i32) {
    %c0_i32 = arith.constant 0 : i32
    %c0_i32_0 = arith.constant 0 : i32
    return %arg0, %c0_i32 : i32, i32
  }
  func.func @transform_2(%arg0: i32) -> (i32, i32) {
    %c0_i32 = arith.constant 0 : i32
    %c0_i32_0 = arith.constant 0 : i32
    return %arg0, %c0_i32 : i32, i32
  }
  func.func @transform_3(%arg0: i32) -> (i32, i32) {
    %c0_i32 = arith.constant 0 : i32
    %c0_i32_0 = arith.constant 0 : i32
    return %arg0, %c0_i32 : i32, i32
  }
}

</mosaic_0001>

<bundles_post_ra>
// kernel: tpu_custom_call.1
= control target key start
LH: loop header
LB: loop body
LE: loop exit
PB: predicated region body
PF: predicated region fallthrough
CT: control target
= control target key end

     0   :  { %s144_s0 = inlined_call_operand.vmem [shape: f32[8,256], index: 0, kind: input, shape index: {}]   ;;  %s145_s1 = inlined_call_operand.vmem [shape: f32[8,1], index: 1, kind: input, shape index: {}]   ;;  %s146_s2 = inlined_call_operand.vmem [shape: f32[8,1], index: 2, kind: input, shape index: {}]   ;;  %s147_s3 = inlined_call_operand.hbm [shape: f32[8,256], index: 3, kind: output, shape index: {}]  }
   0x1   :  { %v15_v0 = vld [vmem:[%s144_s0] sm:$0xff]  ;;  %v16_v1 = vld [vmem:[%s144_s0 + $0x8] sm:$0xff] }
   0x2   :  { %8 = vsyncpa [#allocation3], 0  ;;  %v19_v2 = vadd.f32 %v16_v1, %v15_v0  ;;  %v98_v10 = vmov 0   ;;  %v17_v14 = vld [vmem:[%s145_s1] sm:$0xff]  ;;  %s99_s19 = smov [#allocation2]  }
   0x3   :  { %70 = vset.pattern.permute.xlu1 %v98_v10  ;;  %71 = vset.pattern.permute.xlu0 %v98_v10  ;;  %v34_v15 = vadd.f32 1.0, %v17_v14  ;;  %v18_v18 = vld [vmem:[%s146_s2] sm:$0xff]  ;;  %s60_s20 = sshll.u32 %s99_s19, 4  ;;  %s61_s20 = int_to_ptr.vmem [resolvable:$true] %s60_s20 }
   0x4   :  { %20 = vadd.xlane.f32.xlu0 %v19_v2  ;;  %s74_s1 = scalar_lea.vmem %s61_s20, 256  ;;  %p79_p1 = scmp.lt.s32.totalorder %s61_s20, %s61_s20 }
   0x5   :  { %p75_p0 = scmp.ne.s32.totalorder %s61_s20, %s74_s1  ;;  %p80_p2 = scmp.lt.s32.totalorder %s74_s1, %s74_s1 }
   0x7   :  { %p81_p3 = por %p80_p2, %p79_p1 }
   0x9   :  { %p82_p4 = pnand %p81_p3, %p75_p0 }
  0x91   :  { %v21_v3 = vpop.xlane.xlu0 %20 }
  0x92   :  { %v23_v4 = vmul.f32 0.00390625, %v21_v3 }
  0x94   :  { %v24_v5 = vsub.f32 %v15_v0, %v23_v4  ;;  %v25_v6 = vsub.f32 %v16_v1, %v23_v4 }
  0x96   :  { %v26_v7 = vmul.f32 %v24_v5, %v24_v5  ;;  %v27_v8 = vmul.f32 %v25_v6, %v25_v6 }
  0x98   :  { %v28_v9 = vadd.f32 %v27_v8, %v26_v7 }
  0x9a   :  { %29 = vadd.xlane.f32.xlu0 %v28_v9 }
 0x127   :  { %v30_v11 = vpop.xlane.xlu0 %29 }
 0x128   :  { %v31_v12 = vmul.f32 0.00390625, %v30_v11 }
 0x12a   :  { %v32_v13 = vadd.f32 1e-05, %v31_v12 }
 0x12c   :  { %72 = vrsqrt.f32 %v32_v13 }
 0x136   :  { %v73_v16 = vpop.eup %72 }
 0x137   :  { %v35_v17 = vmul.f32 %v73_v16, %v34_v15 }
 0x139   :  { %40 = vperm.xlu1 %70, %v35_v17   ;;  %v36_v19 = vmul.f32 %v35_v17, %v23_v4 }
 0x13b   :  { %v37_v20 = vsub.f32 %v18_v18, %v36_v19 }
 0x13d   :  { %47 = vperm.xlu1 %70, %v37_v20  }
 0x1b8   :  { %v41_v21 = vpop.permute.xlu1 %40 }
 0x1b9   :  { %v43_v22 = vmul.f32 %v41_v21, %v15_v0  ;;  %v44_v23 = vmul.f32 %v41_v21, %v16_v1 }
 0x1bc   :  { %v48_v24 = vpop.permute.xlu1 %47 }
 0x1bd   :  { %v50_v25 = vadd.f32 %v48_v24, %v43_v22  ;;  %v51_v26 = vadd.f32 %v48_v24, %v44_v23 }
 0x1bf   :  { %52 = vst [vmem:[#allocation2] sm:$0xff] %v50_v25  ;;  %53 = vst [vmem:[#allocation2 + $0x8] sm:$0xff] %v51_v26 }
 0x1c0   :  { %85 = shalt.err (!%p82_p4)
}
 0x1c1   :  { %s86_s22 = scalar_lea.hbm %s147_s3, 256 }
 0x1c2   :  { %p87_p5 = scmp.ne.s32.totalorder %s147_s3, %s86_s22  ;;  %p90_p6 = scmp.lt.u32.totalorder %s86_s22, %s147_s3 }
 0x1c4   :  { %p92_p7 = pnand %p90_p6, %p87_p5 }
 0x1c6   :  { %95 = shalt.err (!%p92_p7)
}
 0x1c7   :  { %63 = dma.vmem_to_hbm [thread:$0]  %s61_s20, 256, %s147_s3, [#allocation3]  }
 0x1c8   :  { %96 = dma.done.wait [#allocation3], 256  }
 0x1c9   :  { %97 = vsyncadd [#allocation3], 4294967040 }
 0x1ca   :  { %67 = vsyncpa [#allocation3], 1 }

</bundles_post_ra>
